<compile_context>
chip_gen: v5e
topology: v5e:2x2
jax: 0.10.0
libtpu: 0.0.40
codegen_flags: <defaults>
</compile_context>

<pallas_src>
import functools

import jax
import jax.numpy as jnp
from jax import lax
from jax.experimental import pallas as pl
from jax.experimental.pallas import tpu as pltpu


def _yolo_decode_kernel(grid_ref, anchor_ref, x_ref, out_ref, *, stride, no_head):
    """Decode one block of (tb, no, ny*nx) channel-first slabs into channel-last output.

    grid_ref  : VMEM (no_head, ns) f32 — row 0 = gx*stride, row 1 = gy*stride, rest zeros.
    anchor_ref: VMEM (tb, no_head, 1) f32 — rows 2/3 hold anchor w/h in pixels, rest 1.0.
    x_ref     : VMEM (tb, no, ns) raw network outputs (native NCHW view, lane = spatial).
    out_ref   : VMEM (tb, ns, no) decoded boxes / probabilities (channel-last).
    """
    x = x_ref[...].astype(jnp.float32)                       # single full-tile load
    x_head = x[:, :no_head, :]                               # first (sublane-aligned) tile

    sig_head = jax.nn.sigmoid(x_head)                        # EUP
    exp_head = jnp.exp(x_head)                               # EUP (only on the head tile)
    c = lax.broadcasted_iota(jnp.int32, x_head.shape, 1)     # channel index

    # ch 0,1: sigmoid*stride + grid*stride ; ch 2,3: exp*anchor_px ; ch 4..: sigmoid
    y_head = jnp.where(
        c < 2,
        sig_head * stride + grid_ref[...],
        jnp.where(c < 4, exp_head * anchor_ref[...], sig_head),
    )

    if x.shape[1] > no_head:                                 # large heads (e.g. COCO no=85)
        y = jnp.concatenate([y_head, jax.nn.sigmoid(x[:, no_head:, :])], axis=1)
    else:
        y = y_head

    # Fused channel-last transpose (XLU) + single full store.
    out_ref[...] = jnp.swapaxes(y, 1, 2).astype(out_ref.dtype)


def _pick_block_slabs(n_slabs, slab_bytes, target_bytes=1 << 20, min_steps=8):
    """Largest divisor of n_slabs with block <= ~1 MiB and >= min_steps grid steps."""
    best = 1
    for tb in range(1, n_slabs + 1):
        if n_slabs % tb:
            continue
        if tb * slab_bytes > target_bytes:
            continue
        if (n_slabs // tb) < min(min_steps, n_slabs):
            continue
        best = tb
    return best


def yolo_layer_forward(p, anchors, nc, img_size, *, io_dtype=None, return_permuted_p=True):
    """Inference-mode YOLOLayer.forward.

    p        : (bs, na*(nc+5), ny, nx) NCHW, like PyTorch.
    anchors  : (na, 2) anchors in pixels.
    io_dtype : optional dtype for the HBM boundary (e.g. jnp.bfloat16 on v6e/v7x).
    returns  : (io, p_out) with io (bs, na*ny*nx, no); p_out is the permuted
               (bs, na, ny, nx, no) tensor when return_permuted_p else the raw p.
    """
    bs, ch, ny, nx = p.shape
    na = anchors.shape[0]
    no = nc + 5
    assert ch == na * no

    img_max = float(img_size) if isinstance(img_size, (int, float)) else float(max(img_size))
    stride = img_max / float(max(nx, ny))
    ns = ny * nx
    n_slabs = bs * na
    no_head = min(no, 8)

    # Kernel input: native NCHW viewed channel-first per (batch, anchor) slab (pure reshape).
    x_cf = p.reshape(n_slabs, no, ns)
    if io_dtype is not None:
        x_cf = x_cf.astype(io_dtype)
    out_dtype = x_cf.dtype
    itemsize = int(jnp.zeros((), out_dtype).dtype.itemsize)

    # Stride-scaled grid offsets packed into the head tile: row 0 = x index, row 1 = y index.
    gy, gx = jnp.meshgrid(jnp.arange(ny, dtype=jnp.float32),
                          jnp.arange(nx, dtype=jnp.float32), indexing="ij")
    grid_full = jnp.zeros((no_head, ns), jnp.float32)
    grid_full = grid_full.at[0].set(gx.reshape(-1) * stride)
    grid_full = grid_full.at[1].set(gy.reshape(-1) * stride)

    # Per-slab anchor multipliers in pixels (exp(wh)*anchor_vec*stride == exp(wh)*anchors),
    # packed into the head-tile channel axis: rows 2/3 = w/h, other rows = 1.0 (masked off).
    anchor_px = jnp.tile(anchors.astype(jnp.float32), (bs, 1))          # (n_slabs, 2)
    anchor_tab = jnp.ones((n_slabs, no_head), jnp.float32)
    anchor_tab = anchor_tab.at[:, 2].set(anchor_px[:, 0]).at[:, 3].set(anchor_px[:, 1])
    anchor_tab = anchor_tab[..., None]                                   # (n_slabs, no_head, 1)

    tb = _pick_block_slabs(n_slabs, no * ns * itemsize)
    kernel = functools.partial(_yolo_decode_kernel, stride=stride, no_head=no_head)

    n_elems = n_slabs * no * ns
    cost = pl.CostEstimate(
        flops=4 * n_elems,
        transcendentals=n_elems + n_slabs * no_head * ns,
        bytes_accessed=2 * n_elems * itemsize,
    )

    out_cl = pl.pallas_call(
        kernel,
        out_shape=jax.ShapeDtypeStruct((n_slabs, ns, no), out_dtype),
        grid=(n_slabs // tb,),
        in_specs=[
            pl.BlockSpec((no_head, ns), lambda i: (0, 0)),        # grid offsets (VMEM-resident)
            pl.BlockSpec((tb, no_head, 1), lambda i: (i, 0, 0)),  # per-slab anchor multipliers
            pl.BlockSpec((tb, no, ns), lambda i: (i, 0, 0)),      # raw network outputs
        ],
        out_specs=pl.BlockSpec((tb, ns, no), lambda i: (i, 0, 0)),
        compiler_params=pltpu.CompilerParams(
            dimension_semantics=("parallel",),
            vmem_limit_bytes=32 * 1024 * 1024,
        ),
        cost_estimate=cost,
    )(grid_full, anchor_tab, x_cf)

    # io: (bs, na*ny*nx, no) — the kernel already wrote channel-last, so this is a pure
    # contiguous reshape (no extra HBM pass), matching io.view(bs, -1, no) in PyTorch.
    io = out_cl.reshape(bs, na * ns, no)

    if return_permuted_p:
        p_out = p.reshape(bs, na, no, ny, nx).transpose(0, 1, 3, 4, 2)
    else:
        p_out = p  # avoid materializing the 5-D transpose when the caller only needs io
    return io, p_out


def yolo_layer_reference(p, anchors, nc, img_size):
    """Pure-JAX port of the PyTorch forward (eval branch), for verification."""
    bs, _, ny, nx = p.shape
    na = anchors.shape[0]
    no = nc + 5
    img_max = float(img_size) if isinstance(img_size, (int, float)) else float(max(img_size))
    stride = img_max / float(max(nx, ny))
    anchor_vec = anchors / stride

    pp = p.reshape(bs, na, no, ny, nx).transpose(0, 1, 3, 4, 2)
    gy, gx = jnp.meshgrid(jnp.arange(ny), jnp.arange(nx), indexing="ij")
    grid_xy = jnp.stack([gx, gy], axis=-1).reshape(1, 1, ny, nx, 2).astype(p.dtype)
    anchor_wh = anchor_vec.reshape(1, na, 1, 1, 2).astype(p.dtype)

    xy = jax.nn.sigmoid(pp[..., :2]) + grid_xy
    wh = jnp.exp(pp[..., 2:4]) * anchor_wh
    box = jnp.concatenate([xy, wh], axis=-1) * stride
    rest = jax.nn.sigmoid(pp[..., 4:])
    io = jnp.concatenate([box, rest], axis=-1)
    return io.reshape(bs, -1, no), pp


if __name__ == "__main__":
    anchors = jnp.array([[10.0, 13.0], [16.0, 30.0], [33.0, 23.0]], dtype=jnp.float32)
    key = jax.random.PRNGKey(0)

    # --- config 1: nc=3 (no=8, single head-tile path), f32 ---
    bs, nc, na, ny, nx = 2, 3, 3, 8, 8
    img_size = (64, 64)                      # stride = 64 / 8 = 8
    p = jax.random.normal(key, (bs, na * (nc + 5), ny, nx), dtype=jnp.float32)

    io, p_perm = yolo_layer_forward(p, anchors, nc, img_size)
    io = jax.block_until_ready(io)
    p_perm = jax.block_until_ready(p_perm)

    io_ref, p_ref = yolo_layer_reference(p, anchors, nc, img_size)
    assert io.shape == (bs, na * ny * nx, nc + 5)
    assert p_perm.shape == (bs, na, ny, nx, nc + 5)
    assert jnp.allclose(io, io_ref, atol=1e-5, rtol=1e-5)
    assert jnp.allclose(p_perm, p_ref, atol=1e-6, rtol=1e-6)

    # --- config 2: nc=15 (no=20, head/tail split path), f32, no p_perm materialization ---
    nc2, bs2 = 15, 1
    p2 = jax.random.normal(jax.random.split(key)[0],
                           (bs2, na * (nc2 + 5), ny, nx), dtype=jnp.float32)
    io2, _ = yolo_layer_forward(p2, anchors, nc2, img_size, return_permuted_p=False)
    io2 = jax.block_until_ready(io2)
    io2_ref, _ = yolo_layer_reference(p2, anchors, nc2, img_size)
    assert jnp.allclose(io2, io2_ref, atol=1e-5, rtol=1e-5)

    # --- config 3: bf16 at the HBM boundary (v6e/v7x bandwidth win), loose tolerance ---
    io3, _ = yolo_layer_forward(p, anchors, nc, img_size,
                                io_dtype=jnp.bfloat16, return_permuted_p=False)
    io3 = jax.block_until_ready(io3)
    assert io3.dtype == jnp.bfloat16
    assert jnp.allclose(io3.astype(jnp.float32), io_ref, atol=1e-1, rtol=3e-2)

    print("KERNEL_OK")
</pallas_src>

<mosaic_0001>
module attributes {stable_mosaic.version = 11 : i64} {
  func.func @_yolo_decode_kernel(%arg0: i32, %arg1: memref<8x64xf32, #tpu.memory_space<vmem>>, %arg2: memref<1x8x1xf32, #tpu.memory_space<vmem>>, %arg3: memref<1x8x64xf32, #tpu.memory_space<vmem>>, %arg4: memref<1x64x8xf32, #tpu.memory_space<vmem>>) attributes {dimension_semantics = [#tpu.dimension_semantics<parallel>], iteration_bounds = array<i64: 6>, scalar_prefetch = 0 : i64, scratch_operands = 0 : i64, tpu.core_type = #tpu.core_type<tc>, window_params = [{pipeline_mode = #tpu.pipeline_mode<synchronous>, transform_indices = @transform_0, window_bounds = array<i64: 8, 64>}, {transform_indices = @transform_1, window_bounds = array<i64: 1, 8, 1>}, {transform_indices = @transform_2, window_bounds = array<i64: 1, 8, 64>}, {transform_indices = @transform_3, window_bounds = array<i64: 1, 64, 8>}]} {
    %c0 = arith.constant 0 : index
    %c0_0 = arith.constant 0 : index
    %c0_1 = arith.constant 0 : index
    %0 = vector.load %arg3[%c0, %c0_0, %c0_1] : memref<1x8x64xf32, #tpu.memory_space<vmem>>, vector<1x8x64xf32>
    %1 = arith.negf %0 : vector<1x8x64xf32>
    %2 = math.exp %1 : vector<1x8x64xf32>
    %cst = arith.constant 1.000000e+00 : f32
    %3 = vector.broadcast %cst : f32 to vector<1x8x64xf32>
    %4 = arith.addf %3, %2 : vector<1x8x64xf32>
    %5 = arith.divf %3, %4 : vector<1x8x64xf32>
    %6 = math.exp %0 : vector<1x8x64xf32>
    %7 = tpu.iota {dimensions = array<i32: 1>} : vector<1x8x64xi32>
    %c2_i32 = arith.constant 2 : i32
    %8 = vector.broadcast %c2_i32 : i32 to vector<1x8x64xi32>
    %9 = arith.cmpi slt, %7, %8 : vector<1x8x64xi32>
    %cst_2 = arith.constant 8.000000e+00 : f32
    %10 = vector.broadcast %cst_2 : f32 to vector<1x8x64xf32>
    %11 = arith.mulf %5, %10 : vector<1x8x64xf32>
    %c0_3 = arith.constant 0 : index
    %c0_4 = arith.constant 0 : index
    %12 = vector.load %arg1[%c0_3, %c0_4] : memref<8x64xf32, #tpu.memory_space<vmem>>, vector<8x64xf32>
    %13 = vector.shape_cast %12 : vector<8x64xf32> to vector<1x8x64xf32>
    %14 = arith.addf %11, %13 : vector<1x8x64xf32>
    %c4_i32 = arith.constant 4 : i32
    %15 = vector.broadcast %c4_i32 : i32 to vector<1x8x64xi32>
    %16 = arith.cmpi slt, %7, %15 : vector<1x8x64xi32>
    %c0_5 = arith.constant 0 : index
    %c0_6 = arith.constant 0 : index
    %c0_7 = arith.constant 0 : index
    %17 = vector.load %arg2[%c0_5, %c0_6, %c0_7] : memref<1x8x1xf32, #tpu.memory_space<vmem>>, vector<1x8x1xf32>
    %18 = vector.broadcast %17 : vector<1x8x1xf32> to vector<1x8x64xf32>
    %19 = arith.mulf %6, %18 : vector<1x8x64xf32>
    %20 = arith.select %16, %19, %5 : vector<1x8x64xi1>, vector<1x8x64xf32>
    %21 = arith.select %9, %14, %20 : vector<1x8x64xi1>, vector<1x8x64xf32>
    %22 = tpu.transpose %21, [0, 2, 1] : vector<1x8x64xf32> -> vector<1x64x8xf32>
    %c0_8 = arith.constant 0 : index
    %c0_9 = arith.constant 0 : index
    %c0_10 = arith.constant 0 : index
    %23 = vector.load %arg4[%c0_8, %c0_9, %c0_10] : memref<1x64x8xf32, #tpu.memory_space<vmem>>, vector<1x64x8xf32>
    tpu.vector_store %arg4[%c0_8, %c0_9, %c0_10], %22 {strides = array<i32>} : memref<1x64x8xf32, #tpu.memory_space<vmem>>, vector<1x64x8xf32>,
    return
  }
  func.func @transform_0(%arg0: i32) -> (i32, i32) {
    %c0_i32 = arith.constant 0 : i32
    %c0_i32_0 = arith.constant 0 : i32
    %c0_i32_1 = arith.constant 0 : i32
    return %c0_i32, %c0_i32_0 : i32, i32
  }
  func.func @transform_1(%arg0: i32) -> (i32, i32, i32) {
    %c0_i32 = arith.constant 0 : i32
    %c0_i32_0 = arith.constant 0 : i32
    %c0_i32_1 = arith.constant 0 : i32
    return %arg0, %c0_i32, %c0_i32_0 : i32, i32, i32
  }
  func.func @transform_2(%arg0: i32) -> (i32, i32, i32) {
    %c0_i32 = arith.constant 0 : i32
    %c0_i32_0 = arith.constant 0 : i32
    %c0_i32_1 = arith.constant 0 : i32
    return %arg0, %c0_i32, %c0_i32_0 : i32, i32, i32
  }
  func.func @transform_3(%arg0: i32) -> (i32, i32, i32) {
    %c0_i32 = arith.constant 0 : i32
    %c0_i32_0 = arith.constant 0 : i32
    %c0_i32_1 = arith.constant 0 : i32
    return %arg0, %c0_i32, %c0_i32_0 : i32, i32, i32
  }
}

</mosaic_0001>

<bundles_post_ra>
// kernel: tpu_custom_call.1
= control target key start
LH: loop header
LB: loop body
LE: loop exit
PB: predicated region body
PF: predicated region fallthrough
CT: control target
= control target key end

     0   :  { %8 = vsyncpa [#allocation3], 0  ;;  %s465_s12 = smov 0   ;;  %s500_s0 = inlined_call_operand.hbm [shape: f32[8,64], index: 0, kind: input, shape index: {}]   ;;  %s501_s1 = inlined_call_operand.vmem [shape: f32[6,8,1], index: 1, kind: input, shape index: {}]   ;;  %s502_s2 = inlined_call_operand.vmem [shape: f32[6,8,64], index: 2, kind: input, shape index: {}]   ;;  %s503_s3 = inlined_call_operand.vmem [shape: f32[6,64,8], index: 3, kind: output, shape index: {}]  }
   0x1 LB: > { %s358_s13 = sadd.s32 4294967295, %s441_s12   ;;  %p360_p0 = scmp.ge.s32.totalorder %s441_s12, 1  ;;  %s441_s12 = sphi %s465_s12, %s14_s12  }
   0x2   : > { %p118_p1 = scmp.lt.s32.totalorder %s441_s12, 7  ;;  %s130_s16 = sshll.u32 %s500_s0, 4  ;;  %s131_s16 = int_to_ptr.hbm [resolvable:$true] %s130_s16 }
   0x3   : > { %p381_p3 = scmp.eq.s32.totalorder %s358_s13, 0  ;;  %s443_s17 = smov [#allocation2]  }
   0x4   : > { %p119_p2 = pnand %p360_p0, %p118_p1  ;;  %s132_s18 = sshll.u32 %s443_s17, 4  ;;  %s133_s18 = int_to_ptr.vmem [resolvable:$true] %s132_s18 }
   0x6   : > { %p377_p4 = pneg %p119_p2  ;;  %159 = sbr.rel (%p119_p2) target bundleno = 359 (0x167), region = 32 }
   0x8   : > { %p378_p5 = pnand %p381_p3, %p377_p4 }
   0xa   : > { %380 = dma.hbm_to_vmem [thread:$0]  (!%p378_p5), %s131_s16, 128, %s133_s18, [#allocation3]  }
   0xb   : > { %436 = dma.done.wait (%p381_p3), [#allocation3], 128  }
   0xc   : > { %438 = vsyncadd (%p381_p3), [#allocation3], 4294967168  ;;  %p187_p6 = scmp.lt.s32.totalorder %s358_s13, 5  ;;  %v444_v0 = vmov 0   ;;  %v222_v16 = vlaneseq  ;;  %v226_v20 = vld [vmem:[#allocation2] sm:$0xff]  ;;  %vm270_vm6 = vcmask 64512  }
   0xd   : > { %394 = vset.pattern.permute.xlu0 %v444_v0 }
   0xe   : > { %s505_s13 = smov (!%p187_p6, %s358_s13), 5  ;;  %v223_v18 = vshrl.u32 %v222_v16, 7 }
   0xf   : > { %s365_s19 = sshll.u32 %s505_s13, 3  ;;  %s372_s26 = sshll.u32 %s505_s13, 6 }
  0x10   : > { %s190_s22 = scalar_lea.vmem %s501_s1, %s365_s19  ;;  %s194_s25 = scalar_lea.vmem %s502_s2, %s365_s19  ;;  %vm228_vm4 = vcmp.lt.s32.totalorder %v223_v18, 4  ;;  %vm224_vm5 = vcmp.lt.s32.totalorder %v223_v18, 2 }
  0x11   : > { %v229_v1 = vld [vmem:[%s190_s22] sm:$0xff]  ;;  %s199_s29 = scalar_lea.vmem %s503_s3, %s372_s26 }
  0x12   : > { %232 = vperm.xlu0 %394, %v229_v1   ;;  %v200_v2 = vld [vmem:[%s194_s25] sm:$0xff] }
  0x13   : > { %v369_v3 = vmul.f32 -1.442695, %v200_v2  ;;  %v220_v13 = vmul.f32 1.442695, %v200_v2 }
  0x15   : > { %395 = vpow2.f32 %v369_v3 }
  0x1b   : > { %v396_v4 = vpop.eup %395 }
  0x1c   : > { %v204_v5 = vadd.f32 1.0, %v396_v4 }
  0x1e   : > { %397 = vrcp.f32 %v204_v5  ;;  %vm210_vm0 = vweird.f32 %v204_v5  ;;  %v216_v10 = vand.u32 2147483648, %v204_v5  ;;  %v214_v12 = vand.u32 2147483647, %v204_v5 }
  0x1f   : > { %399 = vpow2.f32 %v220_v13 }
  0x20   : > { %v217_v14 = vor.u32 1.1754944e-38, %v216_v10  ;;  %vm215_vm3 = vcmp.eq.f32.partialorder %v214_v12, 8.507059e+37 }
  0x24   : > { %v398_v6 = vpop.eup %397 }
  0x25   : > { %v206_v7 = vmul.f32 %v398_v6, %v204_v5  ;;  %vm211_vm1 = vweird.f32 %v398_v6  ;;  %v400_v21 = vpop.eup %399 }
  0x26   : > { %vm212_vm2 = vmor %vm210_vm0, %vm211_vm1 }
  0x27   : > { %v207_v8 = vsub.f32 1.0, %v206_v7 }
  0x29   : > { %v208_v9 = vmul.f32 %v398_v6, %v207_v8 }
  0x2b   : > { %v209_v11 = vadd.f32 %v398_v6, %v208_v9 }
  0x2d   : > { %v213_v15 = vsel %vm212_vm2, %v398_v6, %v209_v11 }
  0x2e   : > { %v218_v17 = vsel %vm215_vm3, %v217_v14, %v213_v15 }
  0x2f   : > { %v225_v19 = vmul.f32 8.0, %v218_v17 }
  0x31   : > { %v227_v23 = vadd.f32 %v226_v20, %v225_v19 }
  0x84   : > { %v233_v22 = vpop.permute.xlu0 %232 }
  0x85   : > { %v235_v24 = vmul.f32 %v400_v21, %v233_v22 }
  0x87   : > { %v236_v25 = vsel %vm228_vm4, %v235_v24, %v218_v17 }
  0x88   : > { %v237_v26 = vsel %vm224_vm5, %v227_v23, %v236_v25 }
  0x89   : > { %238 = vxpose.xlu0.b32.start.end [1/1] (short) (narrow) %v237_v26, 64 }
 0x12d   : > { %v254_v27 = vpop.trf.xlu0 }
 0x12e   : > { %271 = vst.msk [vmem:[%s199_s29] sm:$0xff] %vm270_vm6, %v254_v27 }
 0x135   : > { %v255_v28 = vpop.trf.xlu0 }
 0x136   : > { %272 = vst.msk [vmem:[%s199_s29 + $0x8] sm:$0xff] %vm270_vm6, %v255_v28 }
 0x13d   : > { %v256_v29 = vpop.trf.xlu0 }
 0x13e   : > { %273 = vst.msk [vmem:[%s199_s29 + $0x10] sm:$0xff] %vm270_vm6, %v256_v29 }
 0x145   : > { %v257_v30 = vpop.trf.xlu0 }
 0x146   : > { %274 = vst.msk [vmem:[%s199_s29 + $0x18] sm:$0xff] %vm270_vm6, %v257_v30 }
 0x14d   : > { %v258_v31 = vpop.trf.xlu0 }
 0x14e   : > { %275 = vst.msk [vmem:[%s199_s29 + $0x20] sm:$0xff] %vm270_vm6, %v258_v31 }
 0x155   : > { %v259_v32 = vpop.trf.xlu0 }
 0x156   : > { %276 = vst.msk [vmem:[%s199_s29 + $0x28] sm:$0xff] %vm270_vm6, %v259_v32 }
 0x15d   : > { %v260_v33 = vpop.trf.xlu0 }
 0x15e   : > { %277 = vst.msk [vmem:[%s199_s29 + $0x30] sm:$0xff] %vm270_vm6, %v260_v33 }
 0x165   : > { %v261_v34 = vpop.trf.xlu0 }
 0x166   : > { %278 = vst.msk [vmem:[%s199_s29 + $0x38] sm:$0xff] %vm270_vm6, %v261_v34 }
 0x167 PF: > { %s14_s12 = sadd.s32 1, %s441_s12  }
 0x168   : > { %p11_p7 = scmp.ge.s32.totalorder %s14_s12, 8  }
 0x16a   :  { %13 = sbr.rel (!%p11_p7) target bundleno = 1 (0x1), region = 70 }
 0x16f   :  { %300 = vsyncpa [#allocation3], 1 }
 0x170   :  { %302 = vsyncpa [#allocation3 + $0x1], 1 }

</bundles_post_ra>
